<compile_context>
chip_gen: v5e
topology: v5e:2x2
jax: 0.10.0
libtpu: 0.0.40
codegen_flags: <defaults>
</compile_context>

<pallas_src>
import functools

import jax
import jax.numpy as jnp
from jax.experimental import pallas as pl
from jax.experimental.pallas import tpu as pltpu


def _round_up(x, m):
    return ((x + m - 1) // m) * m


def _pnorm_kernel(x_ref, o_ref, *, eps):
    # x_ref / o_ref: (tile_b, D) VMEM tiles.
    x = x_ref[...].astype(jnp.float32)
    sq_sum = jnp.sum(x * x, axis=1, keepdims=True)           # (tile_b, 1)
    norm = jnp.sqrt(sq_sum)                                   # (tile_b, 1)
    denom = jnp.maximum(norm, jnp.float32(eps))               # F.normalize clamp
    inv = 1.0 / denom                                         # per-row only
    o_ref[...] = (x * inv).astype(o_ref.dtype)                # single VPU mul on the tile


def pnorm(x, eps=1e-10, *, tile_b=None):
    assert x.ndim == 2, "PNorm expects a 2D input (B, D)"
    B, D = x.shape
    itemsize = jnp.dtype(x.dtype).itemsize

    if tile_b is None:
        # Aim for ~4 MiB per input tile (multiple of 8 rows), but never bigger
        # than the (row-padded) batch itself.
        target_tile_bytes = 4 * 1024 * 1024
        rows = max(8, (target_tile_bytes // max(D * itemsize, 1)) // 8 * 8)
        tile_b = int(min(rows, _round_up(B, 8)))
    tile_b = max(8, (int(tile_b) // 8) * 8)

    grid = (pl.cdiv(B, tile_b),)

    # Scoped-VMEM budget: double-buffered input + output tiles, plus f32
    # working copies and some headroom. Clamp to [32 MiB, 64 MiB] so we raise
    # the small defaults but never exceed v7x's 64 MiB physical VMEM.
    tile_bytes = tile_b * D * itemsize
    needed = 4 * tile_bytes + 2 * tile_b * D * 4 + (2 << 20)
    vmem_limit = int(min(max(needed, 32 << 20), 64 << 20))

    kernel = functools.partial(_pnorm_kernel, eps=float(eps))
    return pl.pallas_call(
        kernel,
        out_shape=jax.ShapeDtypeStruct((B, D), x.dtype),
        grid_spec=pltpu.PrefetchScalarGridSpec(
            num_scalar_prefetch=0,
            grid=grid,
            in_specs=[pl.BlockSpec((tile_b, D), lambda i: (i, 0))],
            out_specs=pl.BlockSpec((tile_b, D), lambda i: (i, 0)),
        ),
        compiler_params=pltpu.CompilerParams(
            dimension_semantics=("parallel",),
            vmem_limit_bytes=vmem_limit,
        ),
    )(x)


def pnorm_ref(x, eps=1e-10):
    xf = x.astype(jnp.float32)
    norm = jnp.sqrt(jnp.sum(xf * xf, axis=1, keepdims=True))
    return (xf / jnp.maximum(norm, eps)).astype(x.dtype)


if __name__ == "__main__":
    key = jax.random.PRNGKey(0)

    # Small shapes consistent with the module (2D input).
    B, D = 16, 128
    x = jax.random.normal(key, (B, D), dtype=jnp.float32)

    out = jax.block_until_ready(pnorm(x, eps=1e-10))
    ref = pnorm_ref(x, eps=1e-10)
    assert out.shape == (B, D)
    assert jnp.allclose(out, ref, atol=1e-5, rtol=1e-5), "mismatch vs reference (even B)"

    # Ragged batch (B not a multiple of the row tile) — boundary block is masked.
    B2, D2 = 13, 96
    x2 = jax.random.normal(jax.random.PRNGKey(1), (B2, D2), dtype=jnp.float32)
    out2 = jax.block_until_ready(pnorm(x2, eps=1e-10))
    ref2 = pnorm_ref(x2, eps=1e-10)
    assert out2.shape == (B2, D2)
    assert jnp.allclose(out2, ref2, atol=1e-5, rtol=1e-5), "mismatch vs reference (ragged B)"

    print("KERNEL_OK")
</pallas_src>

<mosaic_0001>
module attributes {stable_mosaic.version = 11 : i64} {
  func.func @_pnorm_kernel(%arg0: i32, %arg1: memref<16x128xf32, #tpu.memory_space<vmem>>, %arg2: memref<16x128xf32, #tpu.memory_space<vmem>>) attributes {dimension_semantics = [#tpu.dimension_semantics<parallel>], iteration_bounds = array<i64: 1>, scalar_prefetch = 0 : i64, scratch_operands = 0 : i64, tpu.core_type = #tpu.core_type<tc>, window_params = [{transform_indices = @transform_0, window_bounds = array<i64: 16, 128>}, {transform_indices = @transform_1, window_bounds = array<i64: 16, 128>}]} {
    %c0 = arith.constant 0 : index
    %c0_0 = arith.constant 0 : index
    %0 = vector.load %arg1[%c0, %c0_0] : memref<16x128xf32, #tpu.memory_space<vmem>>, vector<16x128xf32>
    %1 = arith.mulf %0, %0 : vector<16x128xf32>
    %cst = arith.constant dense<0.000000e+00> : vector<16xf32>
    %2 = vector.multi_reduction <add>, %1, %cst [1] : vector<16x128xf32> to vector<16xf32>
    %3 = vector.shape_cast %2 : vector<16xf32> to vector<16x1xf32>
    %4 = math.sqrt %3 : vector<16x1xf32>
    %cst_1 = arith.constant 1.000000e-10 : f32
    %5 = vector.broadcast %cst_1 : f32 to vector<16x1xf32>
    %6 = arith.maximumf %4, %5 : vector<16x1xf32>
    %cst_2 = arith.constant 1.000000e+00 : f32
    %7 = vector.broadcast %cst_2 : f32 to vector<16x1xf32>
    %8 = arith.divf %7, %6 : vector<16x1xf32>
    %9 = vector.broadcast %8 : vector<16x1xf32> to vector<16x128xf32>
    %10 = arith.mulf %0, %9 : vector<16x128xf32>
    %c0_3 = arith.constant 0 : index
    %c0_4 = arith.constant 0 : index
    %11 = vector.load %arg2[%c0_3, %c0_4] : memref<16x128xf32, #tpu.memory_space<vmem>>, vector<16x128xf32>
    tpu.vector_store %arg2[%c0_3, %c0_4], %10 {strides = array<i32>} : memref<16x128xf32, #tpu.memory_space<vmem>>, vector<16x128xf32>,
    return
  }
  func.func @transform_0(%arg0: i32) -> (i32, i32) {
    %c0_i32 = arith.constant 0 : i32
    %c0_i32_0 = arith.constant 0 : i32
    return %arg0, %c0_i32 : i32, i32
  }
  func.func @transform_1(%arg0: i32) -> (i32, i32) {
    %c0_i32 = arith.constant 0 : i32
    %c0_i32_0 = arith.constant 0 : i32
    return %arg0, %c0_i32 : i32, i32
  }
}

</mosaic_0001>

<bundles_post_ra>
// kernel: tpu_custom_call.1
= control target key start
LH: loop header
LB: loop body
LE: loop exit
PB: predicated region body
PF: predicated region fallthrough
CT: control target
= control target key end

     0   :  { %6 = vsyncpa [#allocation3], 0  ;;  %s207_s0 = inlined_call_operand.hbm [shape: f32[16,128], index: 0, kind: input, shape index: {}]   ;;  %s208_s1 = inlined_call_operand.hbm [shape: f32[16,128], index: 1, kind: output, shape index: {}]  }
   0x1   :  { %7 = vsyncpa [#allocation4], 0  ;;  %s12_s8 = sshll.u32 %s207_s0, 4  ;;  %s176_s9 = smov [#allocation2]   ;;  %s13_s8 = int_to_ptr.hbm [resolvable:$true] %s12_s8 }
   0x2   :  { %s14_s10 = sshll.u32 %s176_s9, 4  ;;  %s177_s11 = smov 128   ;;  %s15_s10 = int_to_ptr.vmem [resolvable:$true] %s14_s10 }
   0x3   :  { %s178_s12 = smov 8  }
   0x4   :  { %20 = dma.hbm_to_vmem [thread:$0]  %s13_s8, 256, %s15_s10, [#allocation3], %s177_s11, %s177_s11, %s178_s12  }
   0x5   :  { %172 = dma.done.wait [#allocation3], 256  }
   0x6   :  { %173 = vsyncadd [#allocation3], 4294967040  ;;  %v25_v0 = vld [vmem:[#allocation2] sm:$0xff]  ;;  %v196_v2 = vld [vmem:[#allocation2 + $0x8] sm:$0xff]  ;;  %s179_s0 = smov [#allocation5]   ;;  %s99_s16 = sshll.u32 %s208_s1, 4  ;;  %s100_s16 = int_to_ptr.hbm [resolvable:$true] %s99_s16 }
   0x7   :  { %v27_v1 = vmul.f32 %v25_v0, %v25_v0  ;;  %v28_v3 = vmul.f32 %v196_v2, %v196_v2  ;;  %s97_s13 = sshll.u32 %s179_s0, 4  ;;  %s98_s13 = int_to_ptr.vmem [resolvable:$true] %s97_s13 }
   0x9   :  { %29 = vadd.xlane.f32.xlu0 %v27_v1 }
  0x11   :  { %31 = vadd.xlane.f32.xlu0 %v28_v3 }
  0x7c   :  { %v30_v4 = vpop.xlane.xlu0 %29 }
  0x7d   :  { %116 = vrsqrt.f32 %v30_v4  ;;  %vm40_vm0 = vcmp.eq.f32.partialorder %v30_v4, inf  ;;  %v43_v16 = vand.u32 2147483648, %v30_v4  ;;  %vm42_vm1 = vcmp.eq.f32.partialorder %v30_v4, 0.0 }
  0x83   :  { %v117_v5 = vpop.eup %116 }
  0x84   :  { %v34_v6 = vmul.f32 %v117_v5, %v30_v4  ;;  %v32_v7 = vpop.xlane.xlu0 %31 }
  0x85   :  { %118 = vrsqrt.f32 %v32_v7  ;;  %vm52_vm2 = vcmp.eq.f32.partialorder %v32_v7, inf  ;;  %v55_v24 = vand.u32 2147483648, %v32_v7  ;;  %vm54_vm3 = vcmp.eq.f32.partialorder %v32_v7, 0.0 }
  0x86   :  { %v35_v8 = vmul.f32 %v117_v5, %v34_v6 }
  0x88   :  { %v36_v9 = vmul.f32 0.5, %v35_v8 }
  0x8a   :  { %v37_v10 = vsub.f32 1.5, %v36_v9 }
  0x8b   :  { %v119_v11 = vpop.eup %118 }
  0x8c   :  { %v38_v12 = vmul.f32 %v117_v5, %v37_v10  ;;  %v46_v13 = vmul.f32 %v119_v11, %v32_v7 }
  0x8e   :  { %v39_v14 = vmul.f32 %v38_v12, %v30_v4  ;;  %v47_v15 = vmul.f32 %v119_v11, %v46_v13 }
  0x90   :  { %v41_v17 = vsel %vm40_vm0, %v30_v4, %v39_v14  ;;  %v48_v18 = vmul.f32 0.5, %v47_v15 }
  0x91   :  { %v44_v19 = vsel %vm42_vm1, %v43_v16, %v41_v17 }
  0x92   :  { %v57_v20 = vmax.f32 %v44_v19, 1e-10  ;;  %v49_v21 = vsub.f32 1.5, %v48_v18 }
  0x94   :  { %120 = vrcp.f32 %v57_v20  ;;  %v50_v22 = vmul.f32 %v119_v11, %v49_v21  ;;  %v70_v31 = vand.u32 2147483648, %v57_v20  ;;  %v68_v33 = vand.u32 2147483647, %v57_v20 }
  0x95   :  { %vm64_vm5 = vweird.f32 %v57_v20 }
  0x96   :  { %v51_v23 = vmul.f32 %v50_v22, %v32_v7  ;;  %v71_v36 = vor.u32 1.1754944e-38, %v70_v31  ;;  %vm69_vm7 = vcmp.eq.f32.partialorder %v68_v33, 8.507059e+37 }
  0x98   :  { %v53_v25 = vsel %vm52_vm2, %v32_v7, %v51_v23 }
  0x99   :  { %v56_v26 = vsel %vm54_vm3, %v55_v24, %v53_v25 }
  0x9a   :  { %v121_v27 = vpop.eup %120  ;;  %v58_v28 = vmax.f32 %v56_v26, 1e-10 }
  0x9b   :  { %v60_v29 = vmul.f32 %v121_v27, %v57_v20  ;;  %vm65_vm4 = vweird.f32 %v121_v27 }
  0x9c   :  { %122 = vrcp.f32 %v58_v28  ;;  %vm66_vm6 = vmor %vm64_vm5, %vm65_vm4  ;;  %v85_v42 = vand.u32 2147483648, %v58_v28  ;;  %v83_v44 = vand.u32 2147483647, %v58_v28  ;;  %vm79_vm9 = vweird.f32 %v58_v28 }
  0x9d   :  { %v61_v30 = vsub.f32 1.0, %v60_v29 }
  0x9e   :  { %v86_v46 = vor.u32 1.1754944e-38, %v85_v42  ;;  %vm84_vm11 = vcmp.eq.f32.partialorder %v83_v44, 8.507059e+37 }
  0x9f   :  { %v62_v32 = vmul.f32 %v121_v27, %v61_v30 }
  0xa1   :  { %v63_v34 = vadd.f32 %v121_v27, %v62_v32 }
  0xa2   :  { %v123_v35 = vpop.eup %122 }
  0xa3   :  { %v67_v37 = vsel %vm66_vm6, %v121_v27, %v63_v34  ;;  %v75_v38 = vmul.f32 %v123_v35, %v58_v28  ;;  %vm80_vm8 = vweird.f32 %v123_v35 }
  0xa4   :  { %v72_v39 = vsel %vm69_vm7, %v71_v36, %v67_v37  ;;  %vm81_vm10 = vmor %vm79_vm9, %vm80_vm8 }
  0xa5   :  { %v76_v40 = vsub.f32 1.0, %v75_v38  ;;  %v89_v41 = vmul.f32 %v72_v39, %v25_v0 }
  0xa7   :  { %v77_v43 = vmul.f32 %v123_v35, %v76_v40  ;;  %91 = vst [vmem:[#allocation5] sm:$0xff] %v89_v41 }
  0xa9   :  { %v78_v45 = vadd.f32 %v123_v35, %v77_v43 }
  0xab   :  { %v82_v47 = vsel %vm81_vm10, %v123_v35, %v78_v45 }
  0xac   :  { %v87_v48 = vsel %vm84_vm11, %v86_v46, %v82_v47 }
  0xad   :  { %v90_v49 = vmul.f32 %v87_v48, %v196_v2 }
  0xaf   :  { %92 = vst [vmem:[#allocation5 + $0x8] sm:$0xff] %v90_v49 }
  0xb0   :  { %105 = dma.vmem_to_hbm [thread:$0]  %s98_s13, 256, %s100_s16, [#allocation4], %s177_s11, %s177_s11, %s178_s12  }
  0xb1   :  { %174 = dma.done.wait [#allocation4], 256  }
  0xb2   :  { %175 = vsyncadd [#allocation4], 4294967040 }
  0xb3   :  { %110 = vsyncpa [#allocation3], 1 }
  0xb4   :  { %111 = vsyncpa [#allocation4], 1 }

</bundles_post_ra>
